<compile_context>
chip_gen: v6e
topology: v6e:2x2x1
jax: 0.10.0
libtpu: 0.0.40
codegen_flags: <defaults>
</compile_context>

<pallas_src>
import functools
import math

import jax
import jax.numpy as jnp
from jax.experimental import pallas as pl

BN_EPS = 1e-5
LANE = 128  # pad every feature dim to one full lane width


def _fused_mlp_kernel(x_ref, w_ref, gb_ref, o_ref, *, num_layers):
    # x_ref : (B, LANE)                 padded input activations
    # w_ref : (num_layers*LANE, LANE)   layer l weight = rows [l*LANE, (l+1)*LANE)
    # gb_ref: (2*num_layers, LANE)      rows 2l = gamma_l, 2l+1 = beta_l
    # o_ref : (B, LANE)                 padded output of the last layer
    h = x_ref[...]
    gb = gb_ref[...]  # tiny (one vreg tile), keep resident
    for l in range(num_layers):  # static unroll, num_layers is small
        w = w_ref[pl.ds(l * LANE, LANE), :]
        # Linear (bias omitted: cancelled exactly by BN mean subtraction).
        z = jnp.dot(h, w, preferred_element_type=jnp.float32)
        # BatchNorm1d, training-mode batch statistics (biased variance).
        mean = jnp.mean(z, axis=0, keepdims=True)
        c = z - mean
        var = jnp.mean(c * c, axis=0, keepdims=True)
        inv_std = jax.lax.rsqrt(var + BN_EPS)
        y = c * inv_std * gb[2 * l : 2 * l + 1, :] + gb[2 * l + 1 : 2 * l + 2, :]
        # ReLU
        h = jnp.maximum(y, 0.0)
    o_ref[...] = h.astype(o_ref.dtype)


@functools.partial(jax.jit, static_argnames=("out_features",))
def simple_mlp_forward(x, w_stacked, gb_stacked, *, out_features):
    B, f_in = x.shape
    num_layers = gb_stacked.shape[0] // 2
    # Pad the input to a full 128-lane slab (zeros beyond f_in contribute
    # nothing because the corresponding weight rows are zero).
    x_p = jnp.zeros((B, LANE), x.dtype).at[:, :f_in].set(x)
    out_p = pl.pallas_call(
        functools.partial(_fused_mlp_kernel, num_layers=num_layers),
        out_shape=jax.ShapeDtypeStruct((B, LANE), jnp.float32),
        in_specs=[
            pl.BlockSpec((B, LANE), lambda: (0, 0)),
            pl.BlockSpec((num_layers * LANE, LANE), lambda: (0, 0)),
            pl.BlockSpec((2 * num_layers, LANE), lambda: (0, 0)),
        ],
        out_specs=pl.BlockSpec((B, LANE), lambda: (0, 0)),
    )(x_p, w_stacked, gb_stacked)
    return out_p[:, :out_features]


def init_simple_mlp_params(key, layer_sizes, input_layer_size):
    """Mirror nn.Linear defaults (uniform +-1/sqrt(fan_in)) + BN gamma=1, beta=0.

    Returns:
      (w_stacked, gb_stacked, out_features): padded/stacked tensors for the kernel.
      raw_params: per-layer unpadded (w, b, gamma, beta) for the pure-JAX reference.
    """
    sizes = [input_layer_size] + list(layer_sizes)
    assert all(s <= LANE for s in sizes), "this fused kernel assumes widths <= 128"
    raw_params = []
    w_blocks = []
    gb_rows = []
    for inn, outt in zip(sizes[:-1], sizes[1:]):
        key, kw, kb = jax.random.split(key, 3)
        bound = 1.0 / math.sqrt(inn)
        # PyTorch stores (out, in); we store the transpose (in, out) so the
        # kernel computes x @ W directly.
        w = jax.random.uniform(kw, (inn, outt), jnp.float32, -bound, bound)
        b = jax.random.uniform(kb, (outt,), jnp.float32, -bound, bound)
        gamma = jnp.ones((outt,), jnp.float32)
        beta = jnp.zeros((outt,), jnp.float32)
        raw_params.append((w, b, gamma, beta))

        # Zero-pad to (LANE, LANE); gamma pads to 1, beta to 0 so padded
        # columns stay exactly zero after BN + ReLU.
        w_p = jnp.zeros((LANE, LANE), jnp.float32).at[:inn, :outt].set(w)
        gamma_p = jnp.ones((LANE,), jnp.float32).at[:outt].set(gamma)
        beta_p = jnp.zeros((LANE,), jnp.float32).at[:outt].set(beta)
        w_blocks.append(w_p)
        gb_rows.append(gamma_p)
        gb_rows.append(beta_p)

    w_stacked = jnp.concatenate(w_blocks, axis=0)        # (L*LANE, LANE)
    gb_stacked = jnp.stack(gb_rows, axis=0)              # (2L, LANE)
    return (w_stacked, gb_stacked, sizes[-1]), raw_params


def _reference_forward(x, raw_params):
    """Pure-JAX reference with the *full* PyTorch semantics (incl. linear bias)."""
    for (w, b, gamma, beta) in raw_params:
        h = x @ w + b
        mean = jnp.mean(h, axis=0, keepdims=True)
        var = jnp.mean((h - mean) ** 2, axis=0, keepdims=True)
        y = (h - mean) / jnp.sqrt(var + BN_EPS) * gamma + beta
        x = jnp.maximum(y, 0.0)
    return x


if __name__ == "__main__":
    key = jax.random.PRNGKey(0)
    k_in, k_params = jax.random.split(key)

    batch = 8
    input_layer_size = 32
    hidden_sizes = (64, 32, 16)  # SimpleMLP(64, 32, 16, input_layer_size=32)

    x = jax.random.normal(k_in, (batch, input_layer_size), jnp.float32)
    (w_stacked, gb_stacked, out_features), raw_params = init_simple_mlp_params(
        k_params, hidden_sizes, input_layer_size
    )

    out = simple_mlp_forward(x, w_stacked, gb_stacked, out_features=out_features)
    out = jax.block_until_ready(out)

    ref = _reference_forward(x, raw_params)
    assert out.shape == (batch, hidden_sizes[-1])
    assert jnp.allclose(out, ref, atol=1e-4, rtol=1e-4), "mismatch vs reference"

    print("KERNEL_OK")
</pallas_src>

<mosaic_0001>
module attributes {stable_mosaic.version = 11 : i64} {
  func.func @_fused_mlp_kernel(%arg0: memref<8x128xf32, #tpu.memory_space<vmem>>, %arg1: memref<384x128xf32, #tpu.memory_space<vmem>>, %arg2: memref<6x128xf32, #tpu.memory_space<vmem>>, %arg3: memref<8x128xf32, #tpu.memory_space<vmem>>) attributes {dimension_semantics = [], scalar_prefetch = 0 : i64, scratch_operands = 0 : i64, tpu.core_type = #tpu.core_type<tc>} {
    %c0 = arith.constant 0 : index
    %c0_0 = arith.constant 0 : index
    %0 = vector.load %arg0[%c0, %c0_0] : memref<8x128xf32, #tpu.memory_space<vmem>>, vector<8x128xf32>
    %c0_1 = arith.constant 0 : index
    %c0_2 = arith.constant 0 : index
    %1 = vector.load %arg2[%c0_1, %c0_2] : memref<6x128xf32, #tpu.memory_space<vmem>>, vector<6x128xf32>
    %c0_3 = arith.constant 0 : index
    %c0_4 = arith.constant 0 : index
    %2 = vector.load %arg1[%c0_3, %c0_4] : memref<384x128xf32, #tpu.memory_space<vmem>>, vector<128x128xf32>
    %cst = arith.constant dense<0.000000e+00> : vector<8x128xf32>
    %3 = tpu.matmul %0, %2, %cst {dimension_numbers = #tpu.dot_dimension_numbers<[1], [0], [0], [1], [0, 0, 1, 1], [], []>} : vector<8x128xf32>, vector<128x128xf32>, vector<8x128xf32> -> vector<8x128xf32>
    %cst_5 = arith.constant dense<0.000000e+00> : vector<128xf32>
    %4 = vector.multi_reduction <add>, %3, %cst_5 [0] : vector<8x128xf32> to vector<128xf32>
    %5 = vector.shape_cast %4 : vector<128xf32> to vector<1x128xf32>
    %cst_6 = arith.constant 8.000000e+00 : f32
    %6 = vector.broadcast %cst_6 : f32 to vector<1x128xf32>
    %7 = arith.divf %5, %6 : vector<1x128xf32>
    %8 = vector.broadcast %7 : vector<1x128xf32> to vector<8x128xf32>
    %9 = arith.subf %3, %8 : vector<8x128xf32>
    %10 = arith.mulf %9, %9 : vector<8x128xf32>
    %cst_7 = arith.constant dense<0.000000e+00> : vector<128xf32>
    %11 = vector.multi_reduction <add>, %10, %cst_7 [0] : vector<8x128xf32> to vector<128xf32>
    %12 = vector.shape_cast %11 : vector<128xf32> to vector<1x128xf32>
    %cst_8 = arith.constant 8.000000e+00 : f32
    %13 = vector.broadcast %cst_8 : f32 to vector<1x128xf32>
    %14 = arith.divf %12, %13 : vector<1x128xf32>
    %cst_9 = arith.constant 9.99999974E-6 : f32
    %15 = vector.broadcast %cst_9 : f32 to vector<1x128xf32>
    %16 = arith.addf %14, %15 : vector<1x128xf32>
    %17 = math.rsqrt %16 : vector<1x128xf32>
    %18 = vector.broadcast %17 : vector<1x128xf32> to vector<8x128xf32>
    %19 = arith.mulf %9, %18 : vector<8x128xf32>
    %20 = vector.extract_strided_slice %1 {offsets = [0, 0], sizes = [1, 128], strides = [1, 1]} : vector<6x128xf32> to vector<1x128xf32>
    %21 = vector.broadcast %20 : vector<1x128xf32> to vector<8x128xf32>
    %22 = arith.mulf %19, %21 : vector<8x128xf32>
    %23 = vector.extract_strided_slice %1 {offsets = [1, 0], sizes = [1, 128], strides = [1, 1]} : vector<6x128xf32> to vector<1x128xf32>
    %24 = vector.broadcast %23 : vector<1x128xf32> to vector<8x128xf32>
    %25 = arith.addf %22, %24 : vector<8x128xf32>
    %cst_10 = arith.constant 0.000000e+00 : f32
    %26 = vector.broadcast %cst_10 : f32 to vector<8x128xf32>
    %27 = arith.maximumf %25, %26 : vector<8x128xf32>
    %c128 = arith.constant 128 : index
    %c0_11 = arith.constant 0 : index
    %28 = vector.load %arg1[%c128, %c0_11] : memref<384x128xf32, #tpu.memory_space<vmem>>, vector<128x128xf32>
    %cst_12 = arith.constant dense<0.000000e+00> : vector<8x128xf32>
    %29 = tpu.matmul %27, %28, %cst_12 {dimension_numbers = #tpu.dot_dimension_numbers<[1], [0], [0], [1], [0, 0, 1, 1], [], []>} : vector<8x128xf32>, vector<128x128xf32>, vector<8x128xf32> -> vector<8x128xf32>
    %cst_13 = arith.constant dense<0.000000e+00> : vector<128xf32>
    %30 = vector.multi_reduction <add>, %29, %cst_13 [0] : vector<8x128xf32> to vector<128xf32>
    %31 = vector.shape_cast %30 : vector<128xf32> to vector<1x128xf32>
    %cst_14 = arith.constant 8.000000e+00 : f32
    %32 = vector.broadcast %cst_14 : f32 to vector<1x128xf32>
    %33 = arith.divf %31, %32 : vector<1x128xf32>
    %34 = vector.broadcast %33 : vector<1x128xf32> to vector<8x128xf32>
    %35 = arith.subf %29, %34 : vector<8x128xf32>
    %36 = arith.mulf %35, %35 : vector<8x128xf32>
    %cst_15 = arith.constant dense<0.000000e+00> : vector<128xf32>
    %37 = vector.multi_reduction <add>, %36, %cst_15 [0] : vector<8x128xf32> to vector<128xf32>
    %38 = vector.shape_cast %37 : vector<128xf32> to vector<1x128xf32>
    %cst_16 = arith.constant 8.000000e+00 : f32
    %39 = vector.broadcast %cst_16 : f32 to vector<1x128xf32>
    %40 = arith.divf %38, %39 : vector<1x128xf32>
    %cst_17 = arith.constant 9.99999974E-6 : f32
    %41 = vector.broadcast %cst_17 : f32 to vector<1x128xf32>
    %42 = arith.addf %40, %41 : vector<1x128xf32>
    %43 = math.rsqrt %42 : vector<1x128xf32>
    %44 = vector.broadcast %43 : vector<1x128xf32> to vector<8x128xf32>
    %45 = arith.mulf %35, %44 : vector<8x128xf32>
    %46 = vector.extract_strided_slice %1 {offsets = [2, 0], sizes = [1, 128], strides = [1, 1]} : vector<6x128xf32> to vector<1x128xf32>
    %47 = vector.broadcast %46 : vector<1x128xf32> to vector<8x128xf32>
    %48 = arith.mulf %45, %47 : vector<8x128xf32>
    %49 = vector.extract_strided_slice %1 {offsets = [3, 0], sizes = [1, 128], strides = [1, 1]} : vector<6x128xf32> to vector<1x128xf32>
    %50 = vector.broadcast %49 : vector<1x128xf32> to vector<8x128xf32>
    %51 = arith.addf %48, %50 : vector<8x128xf32>
    %cst_18 = arith.constant 0.000000e+00 : f32
    %52 = vector.broadcast %cst_18 : f32 to vector<8x128xf32>
    %53 = arith.maximumf %51, %52 : vector<8x128xf32>
    %c256 = arith.constant 256 : index
    %c0_19 = arith.constant 0 : index
    %54 = vector.load %arg1[%c256, %c0_19] : memref<384x128xf32, #tpu.memory_space<vmem>>, vector<128x128xf32>
    %cst_20 = arith.constant dense<0.000000e+00> : vector<8x128xf32>
    %55 = tpu.matmul %53, %54, %cst_20 {dimension_numbers = #tpu.dot_dimension_numbers<[1], [0], [0], [1], [0, 0, 1, 1], [], []>} : vector<8x128xf32>, vector<128x128xf32>, vector<8x128xf32> -> vector<8x128xf32>
    %cst_21 = arith.constant dense<0.000000e+00> : vector<128xf32>
    %56 = vector.multi_reduction <add>, %55, %cst_21 [0] : vector<8x128xf32> to vector<128xf32>
    %57 = vector.shape_cast %56 : vector<128xf32> to vector<1x128xf32>
    %cst_22 = arith.constant 8.000000e+00 : f32
    %58 = vector.broadcast %cst_22 : f32 to vector<1x128xf32>
    %59 = arith.divf %57, %58 : vector<1x128xf32>
    %60 = vector.broadcast %59 : vector<1x128xf32> to vector<8x128xf32>
    %61 = arith.subf %55, %60 : vector<8x128xf32>
    %62 = arith.mulf %61, %61 : vector<8x128xf32>
    %cst_23 = arith.constant dense<0.000000e+00> : vector<128xf32>
    %63 = vector.multi_reduction <add>, %62, %cst_23 [0] : vector<8x128xf32> to vector<128xf32>
    %64 = vector.shape_cast %63 : vector<128xf32> to vector<1x128xf32>
    %cst_24 = arith.constant 8.000000e+00 : f32
    %65 = vector.broadcast %cst_24 : f32 to vector<1x128xf32>
    %66 = arith.divf %64, %65 : vector<1x128xf32>
    %cst_25 = arith.constant 9.99999974E-6 : f32
    %67 = vector.broadcast %cst_25 : f32 to vector<1x128xf32>
    %68 = arith.addf %66, %67 : vector<1x128xf32>
    %69 = math.rsqrt %68 : vector<1x128xf32>
    %70 = vector.broadcast %69 : vector<1x128xf32> to vector<8x128xf32>
    %71 = arith.mulf %61, %70 : vector<8x128xf32>
    %72 = vector.extract_strided_slice %1 {offsets = [4, 0], sizes = [1, 128], strides = [1, 1]} : vector<6x128xf32> to vector<1x128xf32>
    %73 = vector.broadcast %72 : vector<1x128xf32> to vector<8x128xf32>
    %74 = arith.mulf %71, %73 : vector<8x128xf32>
    %75 = vector.extract_strided_slice %1 {offsets = [5, 0], sizes = [1, 128], strides = [1, 1]} : vector<6x128xf32> to vector<1x128xf32>
    %76 = vector.broadcast %75 : vector<1x128xf32> to vector<8x128xf32>
    %77 = arith.addf %74, %76 : vector<8x128xf32>
    %cst_26 = arith.constant 0.000000e+00 : f32
    %78 = vector.broadcast %cst_26 : f32 to vector<8x128xf32>
    %79 = arith.maximumf %77, %78 : vector<8x128xf32>
    %c0_27 = arith.constant 0 : index
    %c0_28 = arith.constant 0 : index
    %80 = vector.load %arg3[%c0_27, %c0_28] : memref<8x128xf32, #tpu.memory_space<vmem>>, vector<8x128xf32>
    tpu.vector_store %arg3[%c0_27, %c0_28], %79 {strides = array<i32>} : memref<8x128xf32, #tpu.memory_space<vmem>>, vector<8x128xf32>,
    return
  }
}

</mosaic_0001>

<bundles_post_ra>
// kernel: simple_mlp_forward.1
= control target key start
LH: loop header
LB: loop body
LE: loop exit
PB: predicated region body
PF: predicated region fallthrough
CT: control target
= control target key end

     0   :  { %8 = vsyncpa [#allocation3], 0  ;;  %s716_s0 = inlined_call_operand.vmem [shape: f32[8,128], index: 0, kind: input, shape index: {}]   ;;  %s717_s1 = inlined_call_operand.hbm [shape: f32[384,128], index: 1, kind: input, shape index: {}]   ;;  %s718_s2 = inlined_call_operand.vmem [shape: f32[6,128], index: 2, kind: input, shape index: {}]   ;;  %s719_s3 = inlined_call_operand.hbm [shape: f32[8,128], index: 3, kind: output, shape index: {}]  }
   0x1   :  { %9 = vsyncpa [#allocation4], 0  ;;  %s608_s12 = smov [#allocation2]  }
   0x2   :  { %s17_s13 = sshll.u32 %s608_s12, 4  ;;  %s18_s13 = int_to_ptr.vmem [resolvable:$true] %s17_s13 }
   0x3   :  { %s572_s14 = scalar_lea.vmem %s18_s13, 6144  ;;  %p577_p1 = scmp.lt.s32.totalorder %s18_s13, %s18_s13 }
   0x4   :  { %p573_p0 = scmp.ne.s32.totalorder %s18_s13, %s572_s14  ;;  %p578_p2 = scmp.lt.s32.totalorder %s572_s14, %s572_s14 }
   0x6   :  { %p579_p3 = por %p578_p2, %p577_p1 }
   0x8   :  { %p580_p4 = pnand %p579_p3, %p573_p0 }
   0xa   :  { %583 = shalt.err (!%p580_p4)
}
   0xb   :  { %s609_s15 = smov 128   ;;  %s610_s16 = smov 8  }
   0xc   :  { %23 = dma.hbm_to_vmem [thread:$0]  %s717_s1, 6144, %s18_s13, [#allocation3], %s609_s15, %s609_s15, %s610_s16  }
   0xd   :  { %604 = dma.done.wait [#allocation3], 6144  }
   0xe   :  { %605 = vsyncadd [#allocation3], 4294961152  ;;  %v611_v0 = vmov 0.0   ;;  %vm612_vm0 = vmmov 0   ;;  %v46_v1 = vld [vmem:[#allocation2 + $0x78] sm:$0xff]  ;;  %v45_v2 = vld [vmem:[#allocation2 + $0x70] sm:$0xff]  ;;  %v137_v53 = vlaneseq }
   0xf   :  { %447 = vmatprep.subr.mxu0 %v611_v0  ;;  %479 = vmatprep.mubr.msk.f32.mxu0 %vm612_vm0, %v611_v0  ;;  %v44_v3 = vld [vmem:[#allocation2 + $0x68] sm:$0xff]  ;;  %v43_v4 = vld [vmem:[#allocation2 + $0x60] sm:$0xff]  ;;  %v42_v5 = vld [vmem:[#allocation2 + $0x58] sm:$0xff] }
  0x10   :  { %482 = vmatprep.subr.mxu1 %v611_v0  ;;  %514 = vmatprep.mubr.msk.f32.mxu1 %vm612_vm0, %v611_v0  ;;  %v41_v6 = vld [vmem:[#allocation2 + $0x50] sm:$0xff]  ;;  %v40_v7 = vld [vmem:[#allocation2 + $0x48] sm:$0xff]  ;;  %v39_v8 = vld [vmem:[#allocation2 + $0x40] sm:$0xff]  ;;  %v679_v54 = vshrl.u32 %v137_v53, 7 }
  0x11   :  { %448 = vmatpush3.msra.mxu0 %v46_v1  ;;  %v38_v9 = vld [vmem:[#allocation2 + $0x38] sm:$0xff]  ;;  %v37_v10 = vld [vmem:[#allocation2 + $0x30] sm:$0xff]  ;;  %v36_v11 = vld [vmem:[#allocation2 + $0x28] sm:$0xff] }
  0x12   :  { %449 = vmatprep.subr.mxu0 %v611_v0  ;;  %v35_v12 = vld [vmem:[#allocation2 + $0x20] sm:$0xff]  ;;  %v34_v13 = vld [vmem:[#allocation2 + $0x18] sm:$0xff]  ;;  %v33_v14 = vld [vmem:[#allocation2 + $0x10] sm:$0xff]  ;;  %v139_v55 = vsub.s32 0, %v679_v54  ;;  %v144_v57 = vsub.s32 1, %v679_v54 }
  0x13   :  { %450 = vmatpush3.msra.mxu0 %v45_v2  ;;  %v32_v15 = vld [vmem:[#allocation2 + $0x8] sm:$0xff]  ;;  %v31_v16 = vld [vmem:[#allocation2] sm:$0xff]  ;;  %v163_v18 = vld [vmem:[#allocation2 + $0xf8] sm:$0xff] }
  0x14   :  { %451 = vmatprep.subr.mxu0 %v611_v0  ;;  %v29_v17 = vld [vmem:[%s716_s0] sm:$0xff]  ;;  %483 = vmatpush3.msra.mxu1 %v163_v18  ;;  %v162_v19 = vld [vmem:[#allocation2 + $0xf0] sm:$0xff]  ;;  %v161_v20 = vld [vmem:[#allocation2 + $0xe8] sm:$0xff] }
  0x15   :  { %452 = vmatpush3.msra.mxu0 %v44_v3  ;;  %484 = vmatprep.subr.mxu1 %v611_v0  ;;  %v160_v21 = vld [vmem:[#allocation2 + $0xe0] sm:$0xff]  ;;  %v159_v22 = vld [vmem:[#allocation2 + $0xd8] sm:$0xff]  ;;  %v158_v23 = vld [vmem:[#allocation2 + $0xd0] sm:$0xff] }
  0x16   :  { %453 = vmatprep.subr.mxu0 %v611_v0  ;;  %485 = vmatpush3.msra.mxu1 %v162_v19  ;;  %v157_v24 = vld [vmem:[#allocation2 + $0xc8] sm:$0xff]  ;;  %v156_v25 = vld [vmem:[#allocation2 + $0xc0] sm:$0xff]  ;;  %v155_v26 = vld [vmem:[#allocation2 + $0xb8] sm:$0xff] }
  0x17   :  { %454 = vmatpush3.msra.mxu0 %v43_v4  ;;  %486 = vmatprep.subr.mxu1 %v611_v0  ;;  %v154_v27 = vld [vmem:[#allocation2 + $0xb0] sm:$0xff]  ;;  %v153_v28 = vld [vmem:[#allocation2 + $0xa8] sm:$0xff]  ;;  %v152_v29 = vld [vmem:[#allocation2 + $0xa0] sm:$0xff] }
  0x18   :  { %455 = vmatprep.subr.mxu0 %v611_v0  ;;  %487 = vmatpush3.msra.mxu1 %v161_v20  ;;  %v151_v30 = vld [vmem:[#allocation2 + $0x98] sm:$0xff]  ;;  %v150_v31 = vld [vmem:[#allocation2 + $0x90] sm:$0xff]  ;;  %v149_v32 = vld [vmem:[#allocation2 + $0x88] sm:$0xff] }
  0x19   :  { %456 = vmatpush3.msra.mxu0 %v42_v5  ;;  %488 = vmatprep.subr.mxu1 %v611_v0  ;;  %v148_v33 = vld [vmem:[#allocation2 + $0x80] sm:$0xff]  ;;  %v279_v2 = vld [vmem:[#allocation2 + $0x178] sm:$0xff]  ;;  %v278_v3 = vld [vmem:[#allocation2 + $0x170] sm:$0xff] }
  0x1a   :  { %457 = vmatprep.subr.mxu0 %v611_v0  ;;  %489 = vmatpush3.msra.mxu1 %v160_v21  ;;  %v685_v56 = vld [vmem:[%s718_s2] sm:$0x3f]  ;;  %v277_v4 = vld [vmem:[#allocation2 + $0x168] sm:$0xff]  ;;  %s613_s2 = smov [#allocation5]  }
  0x1b   :  { %458 = vmatpush3.msra.mxu0 %v41_v6  ;;  %490 = vmatprep.subr.mxu1 %v611_v0  ;;  %v140_v58 = vrot.slane %v685_v56, %v139_v55  ;;  %v145_v61 = vrot.slane %v685_v56, %v144_v57  ;;  %v276_v5 = vld [vmem:[#allocation2 + $0x160] sm:$0xff]  ;;  %v275_v6 = vld [vmem:[#allocation2 + $0x158] sm:$0xff]  ;;  %s387_s21 = sshll.u32 %s613_s2, 4  ;;  %s388_s21 = int_to_ptr.vmem [resolvable:$true] %s387_s21 }
  0x1c   :  { %459 = vmatprep.subr.mxu0 %v611_v0  ;;  %491 = vmatpush3.msra.mxu1 %v159_v22  ;;  %s584_s22 = scalar_lea.vmem %s388_s21, 128  ;;  %p589_p6 = scmp.lt.s32.totalorder %s388_s21, %s388_s21 }
  0x1d   :  { %460 = vmatpush3.msra.mxu0 %v40_v7  ;;  %492 = vmatprep.subr.mxu1 %v611_v0  ;;  %v274_v7 = vld [vmem:[#allocation2 + $0x150] sm:$0xff]  ;;  %p585_p5 = scmp.ne.s32.totalorder %s388_s21, %s584_s22  ;;  %p590_p7 = scmp.lt.s32.totalorder %s584_s22, %s584_s22 }
  0x1e   :  { %461 = vmatprep.subr.mxu0 %v611_v0  ;;  %493 = vmatpush3.msra.mxu1 %v158_v23 }
  0x1f   :  { %462 = vmatpush3.msra.mxu0 %v39_v8  ;;  %494 = vmatprep.subr.mxu1 %v611_v0  ;;  %v273_v8 = vld [vmem:[#allocation2 + $0x148] sm:$0xff]  ;;  %p591_p8 = por %p590_p7, %p589_p6 }
  0x20   :  { %463 = vmatprep.subr.mxu0 %v611_v0  ;;  %495 = vmatpush3.msra.mxu1 %v157_v24 }
  0x21   :  { %464 = vmatpush3.msra.mxu0 %v38_v9  ;;  %496 = vmatprep.subr.mxu1 %v611_v0  ;;  %v272_v9 = vld [vmem:[#allocation2 + $0x140] sm:$0xff]  ;;  %p592_p9 = pnand %p591_p8, %p585_p5 }
  0x22   :  { %465 = vmatprep.subr.mxu0 %v611_v0  ;;  %497 = vmatpush3.msra.mxu1 %v156_v25 }
  0x23   :  { %466 = vmatpush3.msra.mxu0 %v37_v10  ;;  %498 = vmatprep.subr.mxu1 %v611_v0  ;;  %v271_v10 = vld [vmem:[#allocation2 + $0x138] sm:$0xff] }
  0x24   :  { %467 = vmatprep.subr.mxu0 %v611_v0  ;;  %499 = vmatpush3.msra.mxu1 %v155_v26 }
  0x25   :  { %468 = vmatpush3.msra.mxu0 %v36_v11  ;;  %500 = vmatprep.subr.mxu1 %v611_v0  ;;  %v270_v11 = vld [vmem:[#allocation2 + $0x130] sm:$0xff] }
  0x26   :  { %469 = vmatprep.subr.mxu0 %v611_v0  ;;  %501 = vmatpush3.msra.mxu1 %v154_v27 }
  0x27   :  { %470 = vmatpush3.msra.mxu0 %v35_v12  ;;  %502 = vmatprep.subr.mxu1 %v611_v0  ;;  %v269_v12 = vld [vmem:[#allocation2 + $0x128] sm:$0xff] }
  0x28   :  { %471 = vmatprep.subr.mxu0 %v611_v0  ;;  %503 = vmatpush3.msra.mxu1 %v153_v28 }
  0x29   :  { %472 = vmatpush3.msra.mxu0 %v34_v13  ;;  %504 = vmatprep.subr.mxu1 %v611_v0  ;;  %v268_v13 = vld [vmem:[#allocation2 + $0x120] sm:$0xff] }
  0x2a   :  { %473 = vmatprep.subr.mxu0 %v611_v0  ;;  %505 = vmatpush3.msra.mxu1 %v152_v29 }
  0x2b   :  { %474 = vmatpush3.msra.mxu0 %v33_v14  ;;  %506 = vmatprep.subr.mxu1 %v611_v0  ;;  %v267_v14 = vld [vmem:[#allocation2 + $0x118] sm:$0xff] }
  0x2c   :  { %475 = vmatprep.subr.mxu0 %v611_v0  ;;  %507 = vmatpush3.msra.mxu1 %v151_v30 }
  0x2d   :  { %476 = vmatpush3.msra.mxu0 %v32_v15  ;;  %508 = vmatprep.subr.mxu1 %v611_v0  ;;  %v266_v15 = vld [vmem:[#allocation2 + $0x110] sm:$0xff] }
  0x2e   :  { %477 = vmatprep.subr.mxu0 %v611_v0  ;;  %509 = vmatpush3.msra.mxu1 %v150_v31 }
  0x2f   :  { %478 = vmatpush3.msra.mxu0 %v31_v16  ;;  %510 = vmatprep.subr.mxu1 %v611_v0  ;;  %v265_v16 = vld [vmem:[#allocation2 + $0x108] sm:$0xff] }
  0x30   :  { %480 = vmatmul.mubr.f32.vlgmr.msra.gmra.mxu0 %v29_v17  ;;  %517 = vmatprep.subr.mxu0 %v611_v0  ;;  %v264_v17 = vld [vmem:[#allocation2 + $0x100] sm:$0xff] }
  0x31   :  { %549 = vmatprep.mubr.msk.f32.mxu0 %vm612_vm0, %v611_v0  ;;  %511 = vmatpush3.msra.mxu1 %v149_v32 }
  0x32   :  { %512 = vmatprep.subr.mxu1 %v611_v0  ;;  %518 = vmatpush3.msra.mxu0 %v279_v2 }
  0x33   :  { %513 = vmatpush3.msra.mxu1 %v148_v33  ;;  %519 = vmatprep.subr.mxu0 %v611_v0 }
  0x34   :  { %520 = vmatpush3.msra.mxu0 %v278_v3  ;;  %v371_v3 = vsub.s32 4, %v679_v54 }
  0x35   :  { %521 = vmatprep.subr.mxu0 %v611_v0 }
  0x36   :  { %522 = vmatpush3.msra.mxu0 %v277_v4  ;;  %v376_v4 = vsub.s32 5, %v679_v54 }
  0x37   :  { %523 = vmatprep.subr.mxu0 %v611_v0 }
  0x38   :  { %524 = vmatpush3.msra.mxu0 %v276_v5  ;;  %v372_v5 = vrot.slane %v685_v56, %v371_v3 }
  0x39   :  { %525 = vmatprep.subr.mxu0 %v611_v0 }
  0x3a   :  { %526 = vmatpush3.msra.mxu0 %v275_v6 }
  0x3b   :  { %527 = vmatprep.subr.mxu0 %v611_v0 }
  0x3c   :  { %528 = vmatpush3.msra.mxu0 %v274_v7 }
  0x3d   :  { %529 = vmatprep.subr.mxu0 %v611_v0 }
  0x3e   :  { %530 = vmatpush3.msra.mxu0 %v273_v8  ;;  %v377_v8 = vrot.slane %v685_v56, %v376_v4 }
  0x3f   :  { %531 = vmatprep.subr.mxu0 %v611_v0 }
  0x40   :  { %532 = vmatpush3.msra.mxu0 %v272_v9 }
  0x41   :  { %533 = vmatprep.subr.mxu0 %v611_v0 }
  0x42   :  { %534 = vmatpush3.msra.mxu0 %v271_v10 }
  0x43   :  { %535 = vmatprep.subr.mxu0 %v611_v0 }
  0x44   :  { %536 = vmatpush3.msra.mxu0 %v270_v11 }
  0x45   :  { %537 = vmatprep.subr.mxu0 %v611_v0 }
  0x46   :  { %538 = vmatpush3.msra.mxu0 %v269_v12 }
  0x47   :  { %539 = vmatprep.subr.mxu0 %v611_v0 }
  0x48   :  { %540 = vmatpush3.msra.mxu0 %v268_v13 }
  0x49   :  { %541 = vmatprep.subr.mxu0 %v611_v0 }
  0x4a   :  { %542 = vmatpush3.msra.mxu0 %v267_v14 }
  0x4b   :  { %543 = vmatprep.subr.mxu0 %v611_v0 }
  0x4c   :  { %544 = vmatpush3.msra.mxu0 %v266_v15 }
  0x4d   :  { %545 = vmatprep.subr.mxu0 %v611_v0 }
  0x4e   :  { %546 = vmatpush3.msra.mxu0 %v265_v16 }
  0x4f   :  { %547 = vmatprep.subr.mxu0 %v611_v0 }
  0x50   :  { %548 = vmatpush3.msra.mxu0 %v264_v17 }
  0xf0   :  { %v113_v34 = vpop.f32.mrf.mxu0 }
  0xf1   :  { %v117_v35 = vrot.slane %v113_v34, 4 }
  0xf2   :  { %v481_v36 = vpop.f32.mrf.mxu0 }
  0xf3   :  { %v118_v37 = vadd.f32 %v117_v35, %v113_v34  ;;  %v255_v36 = vsub.s32 2, %v679_v54 }
  0xf5   :  { %v119_v38 = vrot.slane %v118_v37, 2 }
  0xf7   :  { %v120_v39 = vadd.f32 %v119_v38, %v118_v37  ;;  %v260_v37 = vsub.s32 3, %v679_v54  ;;  %v256_v38 = vrot.slane %v685_v56, %v255_v36 }
  0xf9   :  { %v121_v40 = vrot.slane %v120_v39, 1 }
  0xfb   :  { %v122_v41 = vadd.f32 %v121_v40, %v120_v39 }
  0xfd   :  { %v124_v42 = vmul.f32 0.125, %v122_v41  ;;  %v261_v41 = vrot.slane %v685_v56, %v260_v37 }
  0xff   :  { %v125_v43 = vsub.f32 %v113_v34, %v124_v42 }
 0x101   :  { %v126_v44 = vmul.f32 %v125_v43, %v125_v43 }
 0x103   :  { %v127_v45 = vrot.slane %v126_v44, 4 }
 0x105   :  { %v128_v46 = vadd.f32 %v127_v45, %v126_v44 }
 0x107   :  { %v129_v47 = vrot.slane %v128_v46, 2 }
 0x109   :  { %v130_v48 = vadd.f32 %v129_v47, %v128_v46 }
 0x10b   :  { %v131_v49 = vrot.slane %v130_v48, 1 }
 0x10d   :  { %v132_v50 = vadd.f32 %v131_v49, %v130_v48 }
 0x10f   :  { %v133_v51 = vmul.f32 0.125, %v132_v50 }
 0x111   :  { %v134_v52 = vadd.f32 1e-05, %v133_v51 }
 0x113   :  { %558 = vrsqrt.f32 %v134_v52 }
 0x120   :  { %v559_v59 = vpop.eup %558 }
 0x121   :  { %v136_v60 = vmul.f32 %v559_v59, %v125_v43 }
 0x123   :  { %v141_v62 = vmul.f32 %v140_v58, %v136_v60 }
 0x125   :  { %v146_v63 = vadd.f32 %v145_v61, %v141_v62 }
 0x127   :  { %v147_v1 = vmax.f32 %v146_v63, 0.0 }
 0x129   :  { %515 = vmatmul.mubr.f32.vlgmr.msra.gmra.mxu1 %v147_v1 }
 0x1e9   :  { %v230_v18 = vpop.f32.mrf.mxu1 }
 0x1ea   :  { %v234_v19 = vrot.slane %v230_v18, 4 }
 0x1eb   :  { %v516_v20 = vpop.f32.mrf.mxu1 }
 0x1ec   :  { %v235_v21 = vadd.f32 %v234_v19, %v230_v18 }
 0x1ee   :  { %v236_v22 = vrot.slane %v235_v21, 2 }
 0x1f0   :  { %v237_v23 = vadd.f32 %v236_v22, %v235_v21 }
 0x1f2   :  { %v238_v24 = vrot.slane %v237_v23, 1 }
 0x1f4   :  { %v239_v25 = vadd.f32 %v238_v24, %v237_v23 }
 0x1f6   :  { %v240_v26 = vmul.f32 0.125, %v239_v25 }
 0x1f8   :  { %v241_v27 = vsub.f32 %v230_v18, %v240_v26 }
 0x1fa   :  { %v242_v28 = vmul.f32 %v241_v27, %v241_v27 }
 0x1fc   :  { %v243_v29 = vrot.slane %v242_v28, 4 }
 0x1fe   :  { %v244_v30 = vadd.f32 %v243_v29, %v242_v28 }
 0x200   :  { %v245_v31 = vrot.slane %v244_v30, 2 }
 0x202   :  { %v246_v32 = vadd.f32 %v245_v31, %v244_v30 }
 0x204   :  { %v247_v33 = vrot.slane %v246_v32, 1 }
 0x206   :  { %v248_v34 = vadd.f32 %v247_v33, %v246_v32 }
 0x208   :  { %v249_v35 = vmul.f32 0.125, %v248_v34 }
 0x20a   :  { %v250_v0 = vadd.f32 1e-05, %v249_v35 }
 0x20c   :  { %560 = vrsqrt.f32 %v250_v0 }
 0x219   :  { %v561_v39 = vpop.eup %560 }
 0x21a   :  { %v252_v40 = vmul.f32 %v561_v39, %v241_v27 }
 0x21c   :  { %v257_v42 = vmul.f32 %v256_v38, %v252_v40 }
 0x21e   :  { %v262_v43 = vadd.f32 %v261_v41, %v257_v42 }
 0x220   :  { %v263_v44 = vmax.f32 %v262_v43, 0.0 }
 0x222   :  { %550 = vmatmul.mubr.f32.vlgmr.msra.gmra.mxu0 %v263_v44 }
 0x2e2   :  { %v346_v45 = vpop.f32.mrf.mxu0 }
 0x2e3   :  { %v350_v46 = vrot.slane %v346_v45, 4 }
 0x2e4   :  { %v551_v47 = vpop.f32.mrf.mxu0 }
 0x2e5   :  { %v351_v48 = vadd.f32 %v350_v46, %v346_v45 }
 0x2e7   :  { %v352_v49 = vrot.slane %v351_v48, 2 }
 0x2e9   :  { %v353_v50 = vadd.f32 %v352_v49, %v351_v48 }
 0x2eb   :  { %v354_v51 = vrot.slane %v353_v50, 1 }
 0x2ed   :  { %v355_v52 = vadd.f32 %v354_v51, %v353_v50 }
 0x2ef   :  { %v356_v53 = vmul.f32 0.125, %v355_v52 }
 0x2f1   :  { %v357_v55 = vsub.f32 %v346_v45, %v356_v53 }
 0x2f3   :  { %v358_v57 = vmul.f32 %v357_v55, %v357_v55 }
 0x2f5   :  { %v359_v58 = vrot.slane %v358_v57, 4 }
 0x2f7   :  { %v360_v59 = vadd.f32 %v359_v58, %v358_v57 }
 0x2f9   :  { %v361_v60 = vrot.slane %v360_v59, 2 }
 0x2fb   :  { %v362_v61 = vadd.f32 %v361_v60, %v360_v59 }
 0x2fd   :  { %v363_v62 = vrot.slane %v362_v61, 1 }
 0x2ff   :  { %v364_v63 = vadd.f32 %v363_v62, %v362_v61 }
 0x301   :  { %v365_v1 = vmul.f32 0.125, %v364_v63 }
 0x303   :  { %v366_v2 = vadd.f32 1e-05, %v365_v1 }
 0x305   :  { %562 = vrsqrt.f32 %v366_v2 }
 0x312   :  { %v563_v6 = vpop.eup %562 }
 0x313   :  { %v368_v7 = vmul.f32 %v563_v6, %v357_v55 }
 0x315   :  { %v373_v9 = vmul.f32 %v372_v5, %v368_v7 }
 0x317   :  { %v378_v10 = vadd.f32 %v377_v8, %v373_v9 }
 0x319   :  { %v379_v11 = vmax.f32 %v378_v10, 0.0 }
 0x31b   :  { %380 = vst [vmem:[#allocation5] sm:$0xff] %v379_v11 }
 0x31c   :  { %595 = shalt.err (!%p592_p9)
}
 0x31d   :  { %390 = dma.vmem_to_hbm [thread:$0]  %s388_s21, 128, %s719_s3, [#allocation4]  }
 0x31e   :  { %606 = dma.done.wait [#allocation4], 128  }
 0x31f   :  { %607 = vsyncadd [#allocation4], 4294967168 }
 0x320   :  { %394 = vsyncpa [#allocation3], 1 }
 0x321   :  { %395 = vsyncpa [#allocation4], 1 }

</bundles_post_ra>
